<compile_context>
chip_gen: v5e
topology: v5e:2x2
jax: 0.10.0
libtpu: 0.0.40
codegen_flags: <defaults>
</compile_context>

<pallas_src>
import jax
import jax.numpy as jnp
from jax import lax
from jax.experimental import pallas as pl
from jax.experimental.pallas import tpu as pltpu


def _patch_embed_kernel(p_ref, w_ref, t_ref, o_ref):
    # p_ref : (K, th)   im2col patch columns (bf16 or f32)
    # w_ref : (E, K)    scale-folded projection weight (bf16 or f32)
    # t_ref : (E, 1)    folded bias/norm shift (f32)
    # o_ref : (E, th)   output tile, already in NCHW channel-major layout
    acc = jnp.dot(w_ref[...], p_ref[...], preferred_element_type=jnp.float32)
    acc = acc + t_ref[...]                      # (E, th) + (E, 1) lane-bcast
    o_ref[...] = acc.astype(o_ref.dtype)


def _pick_hw_tile(HW, N, target):
    """Tile over Hp*Wp: exact divisor, lane-dense (mult of 128) when possible."""
    cands = [d for d in range(128, HW + 1, 128) if HW % d == 0]
    if not cands:
        # TODO(synk): for HW with no multiple-of-128 divisor a masked ragged
        # tail block would allow smaller tiles; fall back to one full-HW block
        # per image (still no padding, last dim equals the full extent).
        return HW
    fit = [d for d in cands if d <= target]
    th = max(fit) if fit else min(cands)
    if N == 1 and HW // th < 2:                 # keep >=2 grid steps for v7x
        smaller = [d for d in fit if HW // d >= 2]
        if smaller:
            th = max(smaller)
    return th


def patch_embed_g(x_nchw, params, patch_size, *, norm=True, hw_tile=1024,
                  compute_dtype=jnp.bfloat16, out_dtype=None):
    """Forward of PatchEmbed_g: stride-P PxP conv projection (+ optional norm).

    Accepts NCHW (PyTorch convention), returns NCHW (N, embed_dim, H/P, W/P).
    """
    N, Cin, H, W = x_nchw.shape
    P = patch_size
    assert H % P == 0 and W % P == 0, "image size must be divisible by patch"
    Hp, Wp = H // P, W // P
    HW = Hp * Wp
    E = params["w"].shape[0]
    K = Cin * P * P
    out_dtype = x_nchw.dtype if out_dtype is None else out_dtype

    # (perf) cast BEFORE the im2col relayout -> bf16 im2col buffer in HBM.
    if compute_dtype is not None:
        x_nchw = x_nchw.astype(compute_dtype)

    # im2col in "patch column" layout (N, K, HW): one XLA transpose.
    # Column order (c, ph, pw) matches weight.reshape(E, K); HW order (hp, wp)
    # matches the NCHW output flattening, so the kernel writes NCHW directly.
    # TODO(synk): folding this relayout into the kernel (in-kernel shuffle of a
    # (Cin, P, W) strip via the XLU) would remove this HBM round trip as well.
    xp = x_nchw.reshape(N, Cin, Hp, P, Wp, P)
    xp = jnp.transpose(xp, (0, 1, 3, 5, 2, 4)).reshape(N, K, HW)

    # Fold conv bias + (eval-mode) norm into weight columns and a single shift:
    #   y = (x @ W + b) * s + t  ==  x @ (W * s) + (b * s + t)
    w_mat = params["w"].reshape(E, K).astype(jnp.float32)          # (E, K)
    bias = params["b"].astype(jnp.float32)
    if norm:
        scale = params["norm_scale"].astype(jnp.float32)
        shift = params["norm_shift"].astype(jnp.float32)
    else:
        scale = jnp.ones((E,), jnp.float32)
        shift = jnp.zeros((E,), jnp.float32)
    w_mat = w_mat * scale[:, None]
    shift_col = (bias * scale + shift).reshape(E, 1)
    if compute_dtype is not None:                                  # bf16 MXU
        w_mat = w_mat.astype(compute_dtype)

    th = _pick_hw_tile(HW, N, hw_tile)
    grid = (N, HW // th)

    act_bytes = jnp.dtype(xp.dtype).itemsize
    out_bytes = jnp.dtype(out_dtype).itemsize
    cost = pl.CostEstimate(
        flops=2 * N * HW * K * E,
        transcendentals=0,
        bytes_accessed=(N * HW * K + E * K) * act_bytes + E * 4
                       + N * HW * E * out_bytes)

    # Scoped-VMEM limit from the actual (double-buffered) tile footprint,
    # leaving headroom rather than claiming v7x's entire 64 MiB.
    tile_vmem = (2 * K * th * act_bytes        # patch tile
                 + 2 * E * K * act_bytes       # weight (grid-invariant)
                 + 2 * E * 128 * 4             # shift (lane-padded)
                 + 2 * E * th * out_bytes      # output tile
                 + E * th * 4)                 # f32 accumulator
    vmem_limit = int(max(8 * 1024 * 1024, 2 * tile_vmem))

    out = pl.pallas_call(
        _patch_embed_kernel,
        out_shape=jax.ShapeDtypeStruct((N, E, HW), out_dtype),
        grid_spec=pltpu.PrefetchScalarGridSpec(
            num_scalar_prefetch=0,
            grid=grid,
            in_specs=[
                pl.BlockSpec((None, K, th), lambda n, t: (n, 0, t)),  # patches
                pl.BlockSpec((E, K), lambda n, t: (0, 0)),            # weight
                pl.BlockSpec((E, 1), lambda n, t: (0, 0)),            # shift
            ],
            out_specs=pl.BlockSpec((None, E, th), lambda n, t: (n, 0, t)),
        ),
        compiler_params=pltpu.CompilerParams(
            dimension_semantics=("parallel", "parallel"),
            vmem_limit_bytes=vmem_limit),
        cost_estimate=cost,
    )(xp, w_mat, shift_col)

    return out.reshape(N, E, Hp, Wp)            # free reshape, already NCHW


def init_params(key, in_chans, embed_dim, patch_size):
    """Synthetic parameters mirroring the module's __init__ shapes."""
    ks = jax.random.split(key, 6)
    fan_in = in_chans * patch_size * patch_size
    w = jax.random.normal(
        ks[0], (embed_dim, in_chans, patch_size, patch_size),
        jnp.float32) / (fan_in ** 0.5)                        # (O, I, kh, kw)
    b = 0.1 * jax.random.normal(ks[1], (embed_dim,), jnp.float32)
    # eval-mode BatchNorm2d(embed_dim) folded to per-channel scale/shift
    gamma = 1.0 + 0.1 * jax.random.normal(ks[2], (embed_dim,), jnp.float32)
    beta = 0.1 * jax.random.normal(ks[3], (embed_dim,), jnp.float32)
    mean = 0.1 * jax.random.normal(ks[4], (embed_dim,), jnp.float32)
    var = jnp.abs(1.0 + 0.1 * jax.random.normal(ks[5], (embed_dim,), jnp.float32))
    eps = 1e-5
    scale = gamma / jnp.sqrt(var + eps)
    shift = beta - mean * scale
    return {"w": w, "b": b, "norm_scale": scale, "norm_shift": shift}


def reference(x_nchw, params, patch_size, norm=True):
    """Pure-JAX (f32) reference for correctness checking."""
    out = lax.conv_general_dilated(
        x_nchw, jnp.transpose(params["w"], (2, 3, 1, 0)),
        window_strides=(patch_size, patch_size), padding="VALID",
        dimension_numbers=("NCHW", "HWIO", "NCHW"))
    out = out + params["b"].reshape(1, -1, 1, 1)
    if norm:
        out = (out * params["norm_scale"].reshape(1, -1, 1, 1)
               + params["norm_shift"].reshape(1, -1, 1, 1))
    return out


if __name__ == "__main__":
    key = jax.random.PRNGKey(0)
    kx, kp = jax.random.split(key)

    # Small shapes consistent with the module: batch=2, in_chans=3, img=32,
    # patch=4, embed_dim=128.  Grid = (2, 1) -> two parallel steps (v7x).
    N, Cin, H, W = 2, 3, 32, 32
    P, E = 4, 128

    x = jax.random.normal(kx, (N, Cin, H, W), jnp.float32)
    params = init_params(kp, Cin, E, P)
    ref = reference(x, params, P, norm=True)

    # Production bf16-operand path (f32 MXU accumulation).
    out_bf16 = jax.block_until_ready(patch_embed_g(x, params, P, norm=True))
    assert out_bf16.shape == (N, E, H // P, W // P)
    assert jnp.allclose(out_bf16, ref, atol=5e-2, rtol=5e-2), float(
        jnp.max(jnp.abs(out_bf16 - ref)))

    # f32-operand path.  Tolerance stays loose because the default XLA/Mosaic
    # matmul precision may use reduced-precision MXU passes for f32 operands
    # (both here and in the reference conv); structural errors would be O(1).
    out_f32 = jax.block_until_ready(
        patch_embed_g(x, params, P, norm=True, compute_dtype=None))
    assert out_f32.shape == (N, E, H // P, W // P)
    assert jnp.allclose(out_f32, ref, atol=2e-2, rtol=2e-2), float(
        jnp.max(jnp.abs(out_f32 - ref)))

    print("KERNEL_OK")
</pallas_src>

<mosaic_0001>
module attributes {stable_mosaic.version = 11 : i64} {
  func.func @_patch_embed_kernel(%arg0: i32, %arg1: i32, %arg2: memref<1x48x64xbf16, #tpu.memory_space<vmem>>, %arg3: memref<128x48xbf16, #tpu.memory_space<vmem>>, %arg4: memref<128x1xf32, #tpu.memory_space<vmem>>, %arg5: memref<1x128x64xf32, #tpu.memory_space<vmem>>) attributes {dimension_semantics = [#tpu.dimension_semantics<parallel>, #tpu.dimension_semantics<parallel>], iteration_bounds = array<i64: 2, 1>, scalar_prefetch = 0 : i64, scratch_operands = 0 : i64, tpu.core_type = #tpu.core_type<tc>, window_params = [{transform_indices = @transform_0, window_bounds = array<i64: 1, 48, 64>}, {pipeline_mode = #tpu.pipeline_mode<synchronous>, transform_indices = @transform_1, window_bounds = array<i64: 128, 48>}, {pipeline_mode = #tpu.pipeline_mode<synchronous>, transform_indices = @transform_2, window_bounds = array<i64: 128, 1>}, {transform_indices = @transform_3, window_bounds = array<i64: 1, 128, 64>}]} {
    %c0 = arith.constant 0 : index
    %c0_0 = arith.constant 0 : index
    %0 = vector.load %arg3[%c0, %c0_0] : memref<128x48xbf16, #tpu.memory_space<vmem>>, vector<128x48xbf16>
    %c0_1 = arith.constant 0 : index
    %c0_2 = arith.constant 0 : index
    %c0_3 = arith.constant 0 : index
    %1 = vector.load %arg2[%c0_1, %c0_2, %c0_3] : memref<1x48x64xbf16, #tpu.memory_space<vmem>>, vector<1x48x64xbf16>
    %2 = vector.shape_cast %1 : vector<1x48x64xbf16> to vector<48x64xbf16>
    %cst = arith.constant dense<0.000000e+00> : vector<128x64xf32>
    %3 = tpu.matmul %0, %2, %cst {dimension_numbers = #tpu.dot_dimension_numbers<[1], [0], [0], [1], [0, 0, 1, 1], [], []>} : vector<128x48xbf16>, vector<48x64xbf16>, vector<128x64xf32> -> vector<128x64xf32>
    %c0_4 = arith.constant 0 : index
    %c0_5 = arith.constant 0 : index
    %4 = vector.load %arg4[%c0_4, %c0_5] : memref<128x1xf32, #tpu.memory_space<vmem>>, vector<128x1xf32>
    %5 = vector.broadcast %4 : vector<128x1xf32> to vector<128x64xf32>
    %6 = arith.addf %3, %5 : vector<128x64xf32>
    %c0_6 = arith.constant 0 : index
    %c0_7 = arith.constant 0 : index
    %c0_8 = arith.constant 0 : index
    %7 = vector.load %arg5[%c0_6, %c0_7, %c0_8] : memref<1x128x64xf32, #tpu.memory_space<vmem>>, vector<1x128x64xf32>
    %8 = vector.shape_cast %7 : vector<1x128x64xf32> to vector<128x64xf32>
    %9 = vector.shape_cast %6 : vector<128x64xf32> to vector<1x128x64xf32>
    tpu.vector_store %arg5[%c0_6, %c0_7, %c0_8], %9 {strides = array<i32>} : memref<1x128x64xf32, #tpu.memory_space<vmem>>, vector<1x128x64xf32>,
    return
  }
  func.func @transform_0(%arg0: i32, %arg1: i32) -> (i32, i32, i32) {
    %c0_i32 = arith.constant 0 : i32
    %c0_i32_0 = arith.constant 0 : i32
    return %arg0, %c0_i32, %arg1 : i32, i32, i32
  }
  func.func @transform_1(%arg0: i32, %arg1: i32) -> (i32, i32) {
    %c0_i32 = arith.constant 0 : i32
    %c0_i32_0 = arith.constant 0 : i32
    %c0_i32_1 = arith.constant 0 : i32
    return %c0_i32, %c0_i32_0 : i32, i32
  }
  func.func @transform_2(%arg0: i32, %arg1: i32) -> (i32, i32) {
    %c0_i32 = arith.constant 0 : i32
    %c0_i32_0 = arith.constant 0 : i32
    %c0_i32_1 = arith.constant 0 : i32
    return %c0_i32, %c0_i32_0 : i32, i32
  }
  func.func @transform_3(%arg0: i32, %arg1: i32) -> (i32, i32, i32) {
    %c0_i32 = arith.constant 0 : i32
    %c0_i32_0 = arith.constant 0 : i32
    return %arg0, %c0_i32, %arg1 : i32, i32, i32
  }
}

</mosaic_0001>

<bundles_post_ra>
// kernel: tpu_custom_call.1
= control target key start
LH: loop header
LB: loop body
LE: loop exit
PB: predicated region body
PF: predicated region fallthrough
CT: control target
= control target key end

     0   :  { %s710_s12 = smov 0   ;;  %s712_s13 = smov 0   ;;  %s861_s0 = inlined_call_operand.vmem [shape: bf16[2,48,64], index: 0, kind: input, shape index: {}]   ;;  %s862_s1 = inlined_call_operand.vmem [shape: bf16[128,48], index: 1, kind: input, shape index: {}]   ;;  %s863_s2 = inlined_call_operand.vmem [shape: f32[128,1], index: 2, kind: input, shape index: {}]   ;;  %s864_s3 = inlined_call_operand.vmem [shape: f32[2,128,64], index: 3, kind: output, shape index: {}]  }
   0x1   :  { %s714_s14 = smov 0  }
   0x2 LB: > { %s25_s15 = sadd.s32 1, %s683_s13  ;;  %p557_p0 = scmp.ge.s32.totalorder %s687_s14, 1  ;;  %s687_s14 = sphi %s714_s14, %s13_s14   ;;  %s683_s13 = sphi %s712_s13, %s866_s13   ;;  %s679_s12 = sphi %s710_s12, %s865_s12  }
   0x3   : > { %p27_p1 = scmp.ge.s32.totalorder %s25_s15, 2  ;;  %p156_p2 = scmp.lt.s32.totalorder %s687_s14, 3 }
   0x5   : > { %s868_s15 = smov (%p27_p1, %s25_s15), 0  ;;  %p157_p3 = pnand %p557_p0, %p156_p2 }
   0x6   : > { %p186_p4 = scmp.lt.s32.totalorder (!%p157_p3), %s679_s12, 1 }
   0x7   : > { %160 = sbr.rel (%p157_p3) target bundleno = 191 (0xbf), region = 32 }
   0xc   : > { %v227_v0 = vld [vmem:[%s863_s2 + $0x10] sm:$0xff]  ;;  %v225_v1 = vld [vmem:[%s863_s2] sm:$0xff]  ;;  %v689_v2 = vmov 0   ;;  %s870_s12 = smov (!%p186_p4, %s679_s12), 1  ;;  %v228_v4 = vld [vmem:[%s863_s2 + $0x18] sm:$0xff]  ;;  %vm379_vm0 = vcmask 392192  }
   0xd   : > { %663 = vset.pattern.permute.xlu1 %v689_v2  ;;  %662 = vset.pattern.permute.xlu0 %v689_v2  ;;  %v229_v3 = vld [vmem:[%s863_s2 + $0x20] sm:$0xff]  ;;  %s636_s22 = smul.u32 24, %s870_s12  ;;  %v226_v5 = vld [vmem:[%s863_s2 + $0x8] sm:$0xff]  ;;  %v232_v10 = vld [vmem:[%s863_s2 + $0x38] sm:$0xff]  ;;  %vm453_vm1 = vcmask 523264  }
   0xe   : > { %253 = vperm.xlu1 %663, %v227_v0   ;;  %243 = vperm.xlu0 %662, %v225_v1   ;;  %v230_v8 = vld [vmem:[%s863_s2 + $0x28] sm:$0xff]  ;;  %v231_v11 = vld [vmem:[%s863_s2 + $0x30] sm:$0xff]  ;;  %v616_v12 = vld [vmem:[%s862_s1] sm:$0xff] }
   0xf   : > { %664 = vset.pattern.permute.xlu2 %v689_v2  ;;  %s193_s25 = scalar_lea.vmem %s861_s0, %s636_s22  ;;  %v618_v13 = vld [vmem:[%s862_s1 + $0x10] sm:$0xff]  ;;  %v620_v14 = vld [vmem:[%s862_s1 + $0x20] sm:$0xff]  ;;  %v234_v18 = vld [vmem:[%s863_s2 + $0x48] sm:$0xff]  ;;  %s615_s22 = sshll.u32 %s870_s12, 7 }
  0x10   : > { %263 = vperm.xlu2 %664, %v229_v3   ;;  %v626_v6 = vld [vmem:[%s193_s25 + $0x10] sm:$0xff]  ;;  %v625_v7 = vld [vmem:[%s193_s25 + $0x8] sm:$0xff]  ;;  %v624_v9 = vld [vmem:[%s193_s25] sm:$0xff]  ;;  %s818_s25 = scalar_lea.vmem %s864_s3, %s615_s22 }
  0x11   : > { %409 = vmatpush.bf16.msra.mxu0 %v626_v6  ;;  %627 = vmatpush.bf16.msra.mxu1 %v626_v6  ;;  %v622_v15 = vld [vmem:[%s862_s1 + $0x30] sm:$0xff]  ;;  %v233_v16 = vld [vmem:[%s863_s2 + $0x40] sm:$0xff]  ;;  %v236_v19 = vld [vmem:[%s863_s2 + $0x58] sm:$0xff] }
  0x12   : > { %628 = vmatpush.bf16.msra.mxu2 %v626_v6  ;;  %629 = vmatpush.bf16.msra.mxu3 %v626_v6  ;;  %v235_v17 = vld [vmem:[%s863_s2 + $0x50] sm:$0xff]  ;;  %v238_v20 = vld [vmem:[%s863_s2 + $0x68] sm:$0xff]  ;;  %v237_v21 = vld [vmem:[%s863_s2 + $0x60] sm:$0xff] }
  0x13   : > { %v617_v22 = vld [vmem:[%s862_s1 + $0x8] sm:$0xff]  ;;  %v619_v23 = vld [vmem:[%s862_s1 + $0x18] sm:$0xff]  ;;  %v239_v26 = vld [vmem:[%s863_s2 + $0x70] sm:$0xff] }
  0x14   : > { %v621_v24 = vld [vmem:[%s862_s1 + $0x28] sm:$0xff]  ;;  %v623_v25 = vld [vmem:[%s862_s1 + $0x38] sm:$0xff] }
  0x15   : > { %410 = vmatpush.bf16.msra.mxu0 %v625_v7  ;;  %630 = vmatpush.bf16.msra.mxu1 %v625_v7  ;;  %v240_v27 = vld [vmem:[%s863_s2 + $0x78] sm:$0xff] }
  0x16   : > { %258 = vperm.xlu1 %663, %v228_v4   ;;  %248 = vperm.xlu0 %662, %v226_v5  }
  0x17   : > { %631 = vmatpush.bf16.msra.mxu2 %v625_v7  ;;  %632 = vmatpush.bf16.msra.mxu3 %v625_v7 }
  0x18   : > { %268 = vperm.xlu2 %664, %v230_v8  }
  0x19   : > { %411 = vmatpush.bf16.msra.mxu0 %v624_v9  ;;  %633 = vmatpush.bf16.msra.mxu1 %v624_v9 }
  0x1b   : > { %634 = vmatpush.bf16.msra.mxu2 %v624_v9  ;;  %635 = vmatpush.bf16.msra.mxu3 %v624_v9 }
  0x1c   : > { %605 = vmatmul.msk.bf16.vlgmr.msra.gmra.mxu0 %vm379_vm0, %v616_v12  ;;  %607 = vmatmul.msk.bf16.vlgmr.msra.gmra.mxu1 %vm379_vm0, %v618_v13 }
  0x1e   : > { %278 = vperm.xlu1 %663, %v232_v10   ;;  %273 = vperm.xlu0 %662, %v231_v11  }
  0x1f   : > { %609 = vmatmul.msk.bf16.vlgmr.msra.gmra.mxu2 %vm379_vm0, %v620_v14  ;;  %611 = vmatmul.msk.bf16.vlgmr.msra.gmra.mxu3 %vm379_vm0, %v622_v15 }
  0x20   : > { %283 = vperm.xlu2 %664, %v233_v16  }
  0x26   : > { %293 = vperm.xlu1 %663, %v235_v17   ;;  %288 = vperm.xlu0 %662, %v234_v18  }
  0x28   : > { %298 = vperm.xlu2 %664, %v236_v19  }
  0x2c   : > { %606 = vmatmul.msk.bf16.gmra.mxu0 %vm379_vm0, %v617_v22  ;;  %608 = vmatmul.msk.bf16.gmra.mxu1 %vm379_vm0, %v619_v23 }
  0x2e   : > { %308 = vperm.xlu1 %663, %v238_v20   ;;  %303 = vperm.xlu0 %662, %v237_v21  }
  0x2f   : > { %610 = vmatmul.msk.bf16.gmra.mxu2 %vm379_vm0, %v621_v24  ;;  %612 = vmatmul.msk.bf16.gmra.mxu3 %vm379_vm0, %v623_v25 }
  0x30   : > { %313 = vperm.xlu2 %664, %v239_v26  }
  0x36   : > { %318 = vperm.xlu0 %662, %v240_v27  }
  0x6a   : > { %v264_v31 = vpop.permute.xlu2 %263 }
  0x72   : > { %v269_v34 = vpop.permute.xlu2 %268 }
  0x7a   : > { %v284_v41 = vpop.permute.xlu2 %283 }
  0x80   : > { %v244_v28 = vpop.permute.xlu0 %243  ;;  %v254_v29 = vpop.permute.xlu1 %253 }
  0x82   : > { %v299_v52 = vpop.permute.xlu2 %298 }
  0x88   : > { %v249_v30 = vpop.permute.xlu0 %248  ;;  %v259_v32 = vpop.permute.xlu1 %258 }
  0x8a   : > { %v314_v62 = vpop.permute.xlu2 %313 }
  0x90   : > { %v274_v33 = vpop.permute.xlu0 %273  ;;  %v279_v35 = vpop.permute.xlu1 %278 }
  0x98   : > { %v289_v36 = vpop.permute.xlu0 %288  ;;  %v294_v42 = vpop.permute.xlu1 %293 }
  0x99   : > { %v413_v37 = vpop.f32.mrf.mxu0  ;;  %v423_v38 = vpop.f32.mrf.mxu1 }
  0x9a   : > { %v414_v39 = vadd.f32 %v413_v37, %v244_v28  ;;  %v424_v40 = vadd.f32 %v423_v38, %v264_v31 }
  0x9c   : > { %454 = vst.msk [vmem:[%s818_s25] sm:$0xff] %vm453_vm1, %v414_v39 }
  0x9d   : > { %458 = vst.msk [vmem:[%s818_s25 + $0x20] sm:$0xff] %vm453_vm1, %v424_v40 }
  0xa0   : > { %v304_v43 = vpop.permute.xlu0 %303  ;;  %v309_v53 = vpop.permute.xlu1 %308 }
  0xa1   : > { %v415_v48 = vpop.f32.mrf.mxu0  ;;  %v425_v49 = vpop.f32.mrf.mxu1 }
  0xa2   : > { %v433_v44 = vpop.f32.mrf.mxu2  ;;  %v443_v45 = vpop.f32.mrf.mxu3  ;;  %v416_v50 = vadd.f32 %v415_v48, %v249_v30  ;;  %v426_v51 = vadd.f32 %v425_v49, %v269_v34 }
  0xa3   : > { %v434_v46 = vadd.f32 %v433_v44, %v284_v41  ;;  %v444_v47 = vadd.f32 %v443_v45, %v304_v43 }
  0xa4   : > { %455 = vst.msk [vmem:[%s818_s25 + $0x8] sm:$0xff] %vm453_vm1, %v416_v50 }
  0xa5   : > { %462 = vst.msk [vmem:[%s818_s25 + $0x40] sm:$0xff] %vm453_vm1, %v434_v46 }
  0xa6   : > { %466 = vst.msk [vmem:[%s818_s25 + $0x60] sm:$0xff] %vm453_vm1, %v444_v47 }
  0xa7   : > { %459 = vst.msk [vmem:[%s818_s25 + $0x28] sm:$0xff] %vm453_vm1, %v426_v51 }
  0xa8   : > { %v319_v7 = vpop.permute.xlu0 %318 }
  0xa9   : > { %v418_v58 = vpop.f32.mrf.mxu0  ;;  %v428_v59 = vpop.f32.mrf.mxu1 }
  0xaa   : > { %v435_v54 = vpop.f32.mrf.mxu2  ;;  %v445_v55 = vpop.f32.mrf.mxu3  ;;  %v419_v60 = vadd.f32 %v418_v58, %v254_v29  ;;  %v429_v61 = vadd.f32 %v428_v59, %v274_v33 }
  0xab   : > { %v436_v56 = vadd.f32 %v435_v54, %v289_v36  ;;  %v446_v57 = vadd.f32 %v445_v55, %v309_v53 }
  0xac   : > { %456 = vst.msk [vmem:[%s818_s25 + $0x10] sm:$0xff] %vm453_vm1, %v419_v60 }
  0xad   : > { %463 = vst.msk [vmem:[%s818_s25 + $0x48] sm:$0xff] %vm453_vm1, %v436_v56 }
  0xae   : > { %467 = vst.msk [vmem:[%s818_s25 + $0x68] sm:$0xff] %vm453_vm1, %v446_v57 }
  0xaf   : > { %460 = vst.msk [vmem:[%s818_s25 + $0x30] sm:$0xff] %vm453_vm1, %v429_v61 }
  0xb1   : > { %v420_v3 = vpop.f32.mrf.mxu0  ;;  %v430_v4 = vpop.f32.mrf.mxu1 }
  0xb2   : > { %v438_v63 = vpop.f32.mrf.mxu2  ;;  %v448_v0 = vpop.f32.mrf.mxu3  ;;  %v421_v5 = vadd.f32 %v420_v3, %v259_v32  ;;  %v431_v6 = vadd.f32 %v430_v4, %v279_v35 }
  0xb3   : > { %v439_v1 = vadd.f32 %v438_v63, %v294_v42  ;;  %v449_v2 = vadd.f32 %v448_v0, %v314_v62 }
  0xb4   : > { %457 = vst.msk [vmem:[%s818_s25 + $0x18] sm:$0xff] %vm453_vm1, %v421_v5 }
  0xb5   : > { %464 = vst.msk [vmem:[%s818_s25 + $0x50] sm:$0xff] %vm453_vm1, %v439_v1 }
  0xb6   : > { %468 = vst.msk [vmem:[%s818_s25 + $0x70] sm:$0xff] %vm453_vm1, %v449_v2 }
  0xb7   : > { %461 = vst.msk [vmem:[%s818_s25 + $0x38] sm:$0xff] %vm453_vm1, %v431_v6 }
  0xba   : > { %v440_v8 = vpop.f32.mrf.mxu2  ;;  %v450_v9 = vpop.f32.mrf.mxu3 }
  0xbb   : > { %v441_v10 = vadd.f32 %v440_v8, %v299_v52  ;;  %v451_v11 = vadd.f32 %v450_v9, %v319_v7 }
  0xbd   : > { %465 = vst.msk [vmem:[%s818_s25 + $0x58] sm:$0xff] %vm453_vm1, %v441_v10 }
  0xbe   : > { %469 = vst.msk [vmem:[%s818_s25 + $0x78] sm:$0xff] %vm453_vm1, %v451_v11 }
  0xbf PF: > { %s13_s14 = sadd.s32 1, %s687_s14   ;;  %s865_s12 = smov %s683_s13 }
  0xc0   : > { %p10_p5 = scmp.ge.s32.totalorder %s13_s14, 4   ;;  %s866_s13 = smov %s868_s15 }
  0xc2   :  { %12 = sbr.rel (!%p10_p5) target bundleno = 2 (0x2), region = 62 }

</bundles_post_ra>
